<compile_context>
chip_gen: v7x
topology: tpu7x:2x2x1
jax: 0.10.0
libtpu: 0.0.40
codegen_flags: <defaults>
</compile_context>

<pallas_src>
import jax
import jax.numpy as jnp
import numpy as np
from jax.experimental import pallas as pl
from jax.experimental.pallas import tpu as pltpu


def _v2s_kernel(x_ref, w_ref, shift_ref, o_ref):
    # x_ref:     (C, TILE_T)  channel-major features for one (batch, time-tile)
    # w_ref:     (C, C)       Linear weight with BN scale folded in (bf16)
    # shift_ref: (C, 1)       folded BN shift = beta - mean * scale  (f32)
    # o_ref:     (C, TILE_T)
    x = x_ref[...].astype(w_ref.dtype)                  # bf16 MXU operands
    y = jnp.dot(w_ref[...], x, preferred_element_type=jnp.float32)
    y = y + shift_ref[...]                              # per-channel shift, broadcast over lanes
    o_ref[...] = jnp.maximum(y, 0.0).astype(o_ref.dtype)


def _round_up(x, m):
    return ((x + m - 1) // m) * m


def v2s_adaptor_pallas(visual, weight, gamma, beta, running_mean, running_var,
                       eps=1e-5, return_mask=False, tile_t=512,
                       matmul_dtype=jnp.bfloat16):
    """visual: (B, C, 1, T). Returns (B, C, 1, T) (and the (B, C, T) mask if asked)."""
    B, C, H, T = visual.shape
    assert H == 1, "V2SAdaptor expects H == 1 (squeeze(2))"

    # Native channel-major layout; the reshape is metadata-only (contiguous).
    x = visual.reshape(B, C, T)

    # Fold eval-mode BatchNorm1d into the constant weight + per-channel shift;
    # cast the folded weight once to the matmul dtype (bf16 by default).
    scale = gamma.astype(jnp.float32) / jnp.sqrt(running_var.astype(jnp.float32) + eps)
    w_folded = (weight.astype(jnp.float32) * scale[:, None]).astype(matmul_dtype)   # (C, C)
    shift = (beta.astype(jnp.float32)
             - running_mean.astype(jnp.float32) * scale).reshape(C, 1)              # (C, 1) f32

    # Time tile: multiple of 128 (lane-dense stores on full tiles), capped so a
    # tiny T doesn't allocate a needlessly large block.  No host-side padding:
    # the ragged edge block is handled by Pallas (masked edge store).
    tile_t = max(128, (int(tile_t) // 128) * 128)
    tile_t = min(tile_t, _round_up(T, 128))
    if B == 1 and T > 128:
        # Keep >= 2 time tiles when possible so both v7x TensorCores get work.
        tile_t = min(tile_t, max(128, _round_up(pl.cdiv(T, 2), 128)))

    grid = (B, pl.cdiv(T, tile_t))

    def _make_call(single_buffer_consts):
        # Constant-index weight/shift blocks don't need a second pipeline
        # buffer; reclaim that VMEM when supported.
        const_kw = {"pipeline_mode": pl.Buffered(1)} if single_buffer_consts else {}
        return pl.pallas_call(
            _v2s_kernel,
            out_shape=jax.ShapeDtypeStruct((B, C, T), visual.dtype),
            grid_spec=pltpu.PrefetchScalarGridSpec(
                num_scalar_prefetch=0,
                grid=grid,
                in_specs=[
                    # Batch axis squeezed out; kernel sees (C, tile_t).
                    pl.BlockSpec((None, C, tile_t), lambda b, t: (b, 0, t)),
                    pl.BlockSpec((C, C), lambda b, t: (0, 0), **const_kw),
                    pl.BlockSpec((C, 1), lambda b, t: (0, 0), **const_kw),
                ],
                out_specs=pl.BlockSpec((None, C, tile_t), lambda b, t: (b, 0, t)),
            ),
            compiler_params=pltpu.CompilerParams(
                dimension_semantics=("parallel", "parallel")),
        )

    try:
        y = _make_call(True)(x, w_folded, shift)
    except Exception:
        # Fallback for JAX versions without pipeline_mode support on
        # pallas_call BlockSpecs (costs only the duplicate constant buffer).
        y = _make_call(False)(x, w_folded, shift)

    channel_att = y                                     # (B, C, T)
    channel_output = channel_att[:, :, None, :]         # (B, C, 1, T), metadata-only
    if return_mask:
        return channel_output, channel_att
    return channel_output


def _reference(visual, weight, gamma, beta, running_mean, running_var, eps=1e-5):
    B, C, _, T = visual.shape
    x = jnp.transpose(visual.reshape(B, C, T), (0, 2, 1))          # (B, T, C)
    y = jnp.einsum('btc,oc->bto', x, weight)                       # Linear, no bias
    y = jnp.transpose(y, (0, 2, 1))                                # (B, C, T)
    y = (y - running_mean[None, :, None]) / jnp.sqrt(running_var[None, :, None] + eps)
    y = y * gamma[None, :, None] + beta[None, :, None]
    y = jnp.maximum(y, 0.0)
    return y[:, :, None, :]


def _run_case(key, B, C, T):
    k_x, k_w, k_g, k_b, k_m, k_v = jax.random.split(key, 6)
    visual = jax.random.normal(k_x, (B, C, 1, T), dtype=jnp.float32)
    weight = jax.random.normal(k_w, (C, C), dtype=jnp.float32) * 0.1     # Linear weight (out, in)
    gamma = 1.0 + 0.1 * jax.random.normal(k_g, (C,), dtype=jnp.float32)
    beta = 0.1 * jax.random.normal(k_b, (C,), dtype=jnp.float32)
    running_mean = 0.1 * jax.random.normal(k_m, (C,), dtype=jnp.float32)
    running_var = 0.5 + jnp.abs(jax.random.normal(k_v, (C,), dtype=jnp.float32))

    out = v2s_adaptor_pallas(visual, weight, gamma, beta, running_mean, running_var)
    out = jax.block_until_ready(out)

    ref = _reference(visual, weight, gamma, beta, running_mean, running_var)
    assert out.shape == (B, C, 1, T)
    # bf16 MXU operands vs f32 reference -> loosened tolerance.
    np.testing.assert_allclose(np.asarray(out), np.asarray(ref), rtol=5e-2, atol=5e-2)


if __name__ == "__main__":
    key = jax.random.PRNGKey(0)
    k1, k2 = jax.random.split(key)
    # Small module-consistent case (in_channels=128; module default is 512),
    # ragged T (< one lane tile) exercises the masked edge store.
    _run_case(k1, B=2, C=128, T=8)
    # B == 1 with ragged T: exercises the >=2 time-tile split (v7x utilization)
    # and the edge block, with no host-side pad/slice.
    _run_case(k2, B=1, C=128, T=200)
    print("KERNEL_OK")
</pallas_src>

<mosaic_0001>
module attributes {stable_mosaic.version = 11 : i64} {
  func.func @_v2s_kernel(%arg0: i32, %arg1: i32, %arg2: memref<1x128x128xf32, #tpu.memory_space<vmem>>, %arg3: memref<128x128xbf16, #tpu.memory_space<vmem>>, %arg4: memref<128x1xf32, #tpu.memory_space<vmem>>, %arg5: memref<1x128x128xf32, #tpu.memory_space<vmem>>) attributes {dimension_semantics = [#tpu.dimension_semantics<parallel>, #tpu.dimension_semantics<parallel>], iteration_bounds = array<i64: 2, 1>, scalar_prefetch = 0 : i64, scratch_operands = 0 : i64, tpu.core_type = #tpu.core_type<tc>, window_params = [{transform_indices = @transform_0, window_bounds = array<i64: 1, 128, 128>}, {pipeline_mode = #tpu.pipeline_mode<synchronous>, transform_indices = @transform_1, window_bounds = array<i64: 128, 128>}, {pipeline_mode = #tpu.pipeline_mode<synchronous>, transform_indices = @transform_2, window_bounds = array<i64: 128, 1>}, {transform_indices = @transform_3, window_bounds = array<i64: 1, 128, 128>}]} {
    %c0 = arith.constant 0 : index
    %c0_0 = arith.constant 0 : index
    %c0_1 = arith.constant 0 : index
    %0 = vector.load %arg2[%c0, %c0_0, %c0_1] : memref<1x128x128xf32, #tpu.memory_space<vmem>>, vector<1x128x128xf32>
    %1 = vector.shape_cast %0 : vector<1x128x128xf32> to vector<128x128xf32>
    %2 = arith.truncf %1 : vector<128x128xf32> to vector<128x128xbf16>
    %c0_2 = arith.constant 0 : index
    %c0_3 = arith.constant 0 : index
    %3 = vector.load %arg3[%c0_2, %c0_3] : memref<128x128xbf16, #tpu.memory_space<vmem>>, vector<128x128xbf16>
    %cst = arith.constant dense<0.000000e+00> : vector<128x128xf32>
    %4 = tpu.matmul %3, %2, %cst {dimension_numbers = #tpu.dot_dimension_numbers<[1], [0], [0], [1], [0, 0, 1, 1], [], []>} : vector<128x128xbf16>, vector<128x128xbf16>, vector<128x128xf32> -> vector<128x128xf32>
    %c0_4 = arith.constant 0 : index
    %c0_5 = arith.constant 0 : index
    %5 = vector.load %arg4[%c0_4, %c0_5] : memref<128x1xf32, #tpu.memory_space<vmem>>, vector<128x1xf32>
    %6 = vector.broadcast %5 : vector<128x1xf32> to vector<128x128xf32>
    %7 = arith.addf %4, %6 : vector<128x128xf32>
    %cst_6 = arith.constant 0.000000e+00 : f32
    %8 = vector.broadcast %cst_6 : f32 to vector<128x128xf32>
    %9 = arith.maximumf %7, %8 : vector<128x128xf32>
    %c0_7 = arith.constant 0 : index
    %c0_8 = arith.constant 0 : index
    %c0_9 = arith.constant 0 : index
    %10 = vector.load %arg5[%c0_7, %c0_8, %c0_9] : memref<1x128x128xf32, #tpu.memory_space<vmem>>, vector<1x128x128xf32>
    %11 = vector.shape_cast %10 : vector<1x128x128xf32> to vector<128x128xf32>
    %12 = vector.shape_cast %9 : vector<128x128xf32> to vector<1x128x128xf32>
    tpu.vector_store %arg5[%c0_7, %c0_8, %c0_9], %12 {strides = array<i32>} : memref<1x128x128xf32, #tpu.memory_space<vmem>>, vector<1x128x128xf32>,
    return
  }
  func.func @transform_0(%arg0: i32, %arg1: i32) -> (i32, i32, i32) {
    %c0_i32 = arith.constant 0 : i32
    %c0_i32_0 = arith.constant 0 : i32
    return %arg0, %c0_i32, %arg1 : i32, i32, i32
  }
  func.func @transform_1(%arg0: i32, %arg1: i32) -> (i32, i32) {
    %c0_i32 = arith.constant 0 : i32
    %c0_i32_0 = arith.constant 0 : i32
    %c0_i32_1 = arith.constant 0 : i32
    return %c0_i32, %c0_i32_0 : i32, i32
  }
  func.func @transform_2(%arg0: i32, %arg1: i32) -> (i32, i32) {
    %c0_i32 = arith.constant 0 : i32
    %c0_i32_0 = arith.constant 0 : i32
    %c0_i32_1 = arith.constant 0 : i32
    return %c0_i32, %c0_i32_0 : i32, i32
  }
  func.func @transform_3(%arg0: i32, %arg1: i32) -> (i32, i32, i32) {
    %c0_i32 = arith.constant 0 : i32
    %c0_i32_0 = arith.constant 0 : i32
    return %arg0, %c0_i32, %arg1 : i32, i32, i32
  }
}

module attributes {stable_mosaic.version = 11 : i64} {
  func.func @_v2s_kernel(%arg0: i32, %arg1: i32, %arg2: memref<1x128x128xf32, #tpu.memory_space<vmem>>, %arg3: memref<128x128xbf16, #tpu.memory_space<vmem>>, %arg4: memref<128x1xf32, #tpu.memory_space<vmem>>, %arg5: memref<1x128x128xf32, #tpu.memory_space<vmem>>) attributes {dimension_semantics = [#tpu.dimension_semantics<parallel>, #tpu.dimension_semantics<parallel>], iteration_bounds = array<i64: 2, 1>, scalar_prefetch = 0 : i64, scratch_operands = 0 : i64, tpu.core_type = #tpu.core_type<tc>, window_params = [{transform_indices = @transform_0, window_bounds = array<i64: 1, 128, 128>}, {pipeline_mode = #tpu.pipeline_mode<synchronous>, transform_indices = @transform_1, window_bounds = array<i64: 128, 128>}, {pipeline_mode = #tpu.pipeline_mode<synchronous>, transform_indices = @transform_2, window_bounds = array<i64: 128, 1>}, {transform_indices = @transform_3, window_bounds = array<i64: 1, 128, 128>}]} {
    %c0 = arith.constant 0 : index
    %c0_0 = arith.constant 0 : index
    %c0_1 = arith.constant 0 : index
    %0 = vector.load %arg2[%c0, %c0_0, %c0_1] : memref<1x128x128xf32, #tpu.memory_space<vmem>>, vector<1x128x128xf32>
    %1 = vector.shape_cast %0 : vector<1x128x128xf32> to vector<128x128xf32>
    %2 = arith.truncf %1 : vector<128x128xf32> to vector<128x128xbf16>
    %c0_2 = arith.constant 0 : index
    %c0_3 = arith.constant 0 : index
    %3 = vector.load %arg3[%c0_2, %c0_3] : memref<128x128xbf16, #tpu.memory_space<vmem>>, vector<128x128xbf16>
    %cst = arith.constant dense<0.000000e+00> : vector<128x128xf32>
    %4 = tpu.matmul %3, %2, %cst {dimension_numbers = #tpu.dot_dimension_numbers<[1], [0], [0], [1], [0, 0, 1, 1], [], []>} : vector<128x128xbf16>, vector<128x128xbf16>, vector<128x128xf32> -> vector<128x128xf32>
    %c0_4 = arith.constant 0 : index
    %c0_5 = arith.constant 0 : index
    %5 = vector.load %arg4[%c0_4, %c0_5] : memref<128x1xf32, #tpu.memory_space<vmem>>, vector<128x1xf32>
    %6 = vector.broadcast %5 : vector<128x1xf32> to vector<128x128xf32>
    %7 = arith.addf %4, %6 : vector<128x128xf32>
    %cst_6 = arith.constant 0.000000e+00 : f32
    %8 = vector.broadcast %cst_6 : f32 to vector<128x128xf32>
    %9 = arith.maximumf %7, %8 : vector<128x128xf32>
    %c0_7 = arith.constant 0 : index
    %c0_8 = arith.constant 0 : index
    %c0_9 = arith.constant 0 : index
    %10 = vector.load %arg5[%c0_7, %c0_8, %c0_9] : memref<1x128x128xf32, #tpu.memory_space<vmem>>, vector<1x128x128xf32>
    %11 = vector.shape_cast %10 : vector<1x128x128xf32> to vector<128x128xf32>
    %12 = vector.shape_cast %9 : vector<128x128xf32> to vector<1x128x128xf32>
    tpu.vector_store %arg5[%c0_7, %c0_8, %c0_9], %12 {strides = array<i32>} : memref<1x128x128xf32, #tpu.memory_space<vmem>>, vector<1x128x128xf32>,
    return
  }
  func.func @transform_0(%arg0: i32, %arg1: i32) -> (i32, i32, i32) {
    %c0_i32 = arith.constant 0 : i32
    %c0_i32_0 = arith.constant 0 : i32
    return %arg0, %c0_i32, %arg1 : i32, i32, i32
  }
  func.func @transform_1(%arg0: i32, %arg1: i32) -> (i32, i32) {
    %c0_i32 = arith.constant 0 : i32
    %c0_i32_0 = arith.constant 0 : i32
    %c0_i32_1 = arith.constant 0 : i32
    return %c0_i32, %c0_i32_0 : i32, i32
  }
  func.func @transform_2(%arg0: i32, %arg1: i32) -> (i32, i32) {
    %c0_i32 = arith.constant 0 : i32
    %c0_i32_0 = arith.constant 0 : i32
    %c0_i32_1 = arith.constant 0 : i32
    return %c0_i32, %c0_i32_0 : i32, i32
  }
  func.func @transform_3(%arg0: i32, %arg1: i32) -> (i32, i32, i32) {
    %c0_i32 = arith.constant 0 : i32
    %c0_i32_0 = arith.constant 0 : i32
    return %arg0, %c0_i32, %arg1 : i32, i32, i32
  }
}

</mosaic_0001>

<bundles_post_ra>
// kernel: tpu_custom_call.1
= control target key start
LH: loop header
LB: loop body
LE: loop exit
PB: predicated region body
PF: predicated region fallthrough
CT: control target
= control target key end

     0   :  { %s764_s12 = smov 0   ;;  %s766_s13 = smov 0   ;;  %s915_s0 = inlined_call_operand.vmem [shape: f32[2,128,8], index: 0, kind: input, shape index: {}]   ;;  %s916_s1 = inlined_call_operand.vmem [shape: bf16[128,128], index: 1, kind: input, shape index: {}]   ;;  %s917_s2 = inlined_call_operand.vmem [shape: f32[128,1], index: 2, kind: input, shape index: {}]   ;;  %s918_s3 = inlined_call_operand.vmem [shape: f32[2,128,8], index: 3, kind: output, shape index: {}]  }
   0x1   :  { %s768_s14 = smov 0  }
   0x2 LB: > { %s25_s15 = sadd.s32 1, %s737_s13  ;;  %p603_p0 = scmp.ge.s32.totalorder %s741_s14, 1  ;;  %s741_s14 = sphi %s768_s14, %s13_s14   ;;  %s737_s13 = sphi %s766_s13, %s920_s13   ;;  %s733_s12 = sphi %s764_s12, %s919_s12  }
   0x3   : > { %p27_p1 = scmp.ge.s32.totalorder %s25_s15, 2  ;;  %p156_p2 = scmp.lt.s32.totalorder %s741_s14, 3 }
   0x5   : > { %s922_s15 = smov (%p27_p1, %s25_s15), 0  ;;  %p157_p3 = pnand %p603_p0, %p156_p2 }
   0x6   : > { %p186_p4 = scmp.lt.s32.totalorder (!%p157_p3), %s733_s12, 1  ;;  %v711_v0 = vld [vmem:[%s916_s1] sm:$0xff] (!%p157_p3)   ;;  %v743_v2 = vmov (!%p157_p3), 0   ;;  %v245_v14 = vld [vmem:[%s917_s2 + $0x10] sm:$0xff] (!%p157_p3)  ;;  %v246_v19 = vld [vmem:[%s917_s2 + $0x18] sm:$0xff] (!%p157_p3) }
   0x7   : > { %160 = sbr.rel (%p157_p3) target bundleno = 280 (0x118), region = 32  ;;  %v712_v1 = vld [vmem:[%s916_s1 + $0x20] sm:$0xff] (!%p157_p3)   ;;  %652 = vmatprep.mubr.bf16.mxu0 (!%p157_p3), %v711_v0  ;;  %710 = vset.pattern.permute.xlu1 (!%p157_p3), %v743_v2  ;;  %v244_v20 = vld [vmem:[%s917_s2 + $0x8] sm:$0xff] (!%p157_p3)  ;;  %v250_v29 = vld [vmem:[%s917_s2 + $0x38] sm:$0xff] (!%p157_p3) }
   0x8   : > { %660 = vmatprep.mubr.bf16.mxu1 (!%p157_p3), %v712_v1  ;;  %709 = vset.pattern.permute.xlu0 (!%p157_p3), %v743_v2  ;;  %v243_v15 = vld [vmem:[%s917_s2] sm:$0xff] (!%p157_p3)  ;;  %v248_v24 = vld [vmem:[%s917_s2 + $0x28] sm:$0xff] (!%p157_p3)  ;;  %v249_v30 = vld [vmem:[%s917_s2 + $0x30] sm:$0xff] (!%p157_p3) }
   0x9   : > { %271 = vperm.xlu1 (!%p157_p3), %710, %v245_v14   ;;  %261 = vperm.xlu0 (!%p157_p3), %709, %v243_v15   ;;  %v247_v25 = vld [vmem:[%s917_s2 + $0x20] sm:$0xff] (!%p157_p3)  ;;  %v252_v34 = vld [vmem:[%s917_s2 + $0x48] sm:$0xff] (!%p157_p3)  ;;  %v254_v37 = vld [vmem:[%s917_s2 + $0x58] sm:$0xff] (!%p157_p3) }
   0xa   : > { %v251_v35 = vld [vmem:[%s917_s2 + $0x40] sm:$0xff] (!%p157_p3)  ;;  %v253_v38 = vld [vmem:[%s917_s2 + $0x50] sm:$0xff] (!%p157_p3)  ;;  %v713_v39 = vld [vmem:[%s916_s1 + $0x8] sm:$0xff] (!%p157_p3)  }
   0xb   : > { %v714_v40 = vld [vmem:[%s916_s1 + $0x28] sm:$0xff] (!%p157_p3)   ;;  %v255_v42 = vld [vmem:[%s917_s2 + $0x60] sm:$0xff] (!%p157_p3)  ;;  %v715_v43 = vld [vmem:[%s916_s1 + $0x10] sm:$0xff] (!%p157_p3)  }
   0xc   : > { %v256_v41 = vld [vmem:[%s917_s2 + $0x68] sm:$0xff] (!%p157_p3)  ;;  %v716_v44 = vld [vmem:[%s916_s1 + $0x30] sm:$0xff] (!%p157_p3)   ;;  %v258_v45 = vld [vmem:[%s917_s2 + $0x78] sm:$0xff] (!%p157_p3) }
   0xd   : > { %276 = vperm.xlu1 (!%p157_p3), %710, %v246_v19   ;;  %266 = vperm.xlu0 (!%p157_p3), %709, %v244_v20   ;;  %v257_v46 = vld [vmem:[%s917_s2 + $0x70] sm:$0xff] (!%p157_p3)  ;;  %v717_v47 = vld [vmem:[%s916_s1 + $0x18] sm:$0xff] (!%p157_p3)  }
   0xe   : > { %s924_s12 = smov (!%p186_p4, %s733_s12), 1  ;;  %v718_v48 = vld [vmem:[%s916_s1 + $0x38] sm:$0xff]  }
   0xf   : > { %s618_s20 = sshll.u32 %s924_s12, 7 }
  0x10   : > { %s796_s23 = scalar_lea.vmem %s915_s0, %s618_s20  ;;  %s887_s26 = scalar_lea.vmem %s918_s3, %s618_s20 }
  0x11   : > { %v203_v3 = vld [vmem:[%s796_s23] sm:$0xff]  ;;  %v204_v4 = vld [vmem:[%s796_s23 + $0x8] sm:$0xff]  ;;  %v205_v5 = vld [vmem:[%s796_s23 + $0x10] sm:$0xff]  ;;  %286 = vperm.xlu1 %710, %v248_v24   ;;  %281 = vperm.xlu0 %709, %v247_v25  }
  0x12   : > { %v219_v6 = vpack.c.bf16 %v204_v4, %v203_v3  ;;  %v206_v7 = vld [vmem:[%s796_s23 + $0x18] sm:$0xff]  ;;  %v207_v9 = vld [vmem:[%s796_s23 + $0x20] sm:$0xff]  ;;  %v208_v10 = vld [vmem:[%s796_s23 + $0x28] sm:$0xff] }
  0x13   : > { %v220_v8 = vpack.c.bf16 %v206_v7, %v205_v5  ;;  %v221_v11 = vpack.c.bf16 %v208_v10, %v207_v9  ;;  %v209_v12 = vld [vmem:[%s796_s23 + $0x30] sm:$0xff]  ;;  %v210_v13 = vld [vmem:[%s796_s23 + $0x38] sm:$0xff]  ;;  %v211_v17 = vld [vmem:[%s796_s23 + $0x40] sm:$0xff] }
  0x14   : > { %636 = vmatprep.subr.bf16.mxu0 %v219_v6  ;;  %668 = vmatprep.subr.bf16.mxu1 %v219_v6  ;;  %v222_v16 = vpack.c.bf16 %v210_v13, %v209_v12  ;;  %v212_v18 = vld [vmem:[%s796_s23 + $0x48] sm:$0xff]  ;;  %v213_v22 = vld [vmem:[%s796_s23 + $0x50] sm:$0xff]  ;;  %v214_v23 = vld [vmem:[%s796_s23 + $0x58] sm:$0xff] }
  0x15   : > { %637 = vmatpush3.bf16.msra.mxu0 %v219_v6  ;;  %676 = vmatpush3.bf16.msra.mxu1 %v219_v6  ;;  %v223_v21 = vpack.c.bf16 %v212_v18, %v211_v17  ;;  %v224_v26 = vpack.c.bf16 %v214_v23, %v213_v22  ;;  %v215_v27 = vld [vmem:[%s796_s23 + $0x60] sm:$0xff]  ;;  %v216_v28 = vld [vmem:[%s796_s23 + $0x68] sm:$0xff]  ;;  %v217_v32 = vld [vmem:[%s796_s23 + $0x70] sm:$0xff] }
  0x16   : > { %638 = vmatprep.subr.bf16.mxu0 %v220_v8  ;;  %669 = vmatprep.subr.bf16.mxu1 %v220_v8  ;;  %v225_v31 = vpack.c.bf16 %v216_v28, %v215_v27  ;;  %v218_v33 = vld [vmem:[%s796_s23 + $0x78] sm:$0xff] }
  0x17   : > { %296 = vperm.xlu1 %710, %v250_v29   ;;  %291 = vperm.xlu0 %709, %v249_v30   ;;  %v226_v36 = vpack.c.bf16 %v218_v33, %v217_v32 }
  0x19   : > { %639 = vmatpush3.bf16.msra.mxu0 %v220_v8  ;;  %677 = vmatpush3.bf16.msra.mxu1 %v220_v8 }
  0x1a   : > { %640 = vmatprep.subr.bf16.mxu0 %v221_v11  ;;  %670 = vmatprep.subr.bf16.mxu1 %v221_v11 }
  0x1b   : > { %306 = vperm.xlu1 %710, %v252_v34   ;;  %301 = vperm.xlu0 %709, %v251_v35  }
  0x1d   : > { %641 = vmatpush3.bf16.msra.mxu0 %v221_v11  ;;  %678 = vmatpush3.bf16.msra.mxu1 %v221_v11 }
  0x1e   : > { %642 = vmatprep.subr.bf16.mxu0 %v222_v16  ;;  %671 = vmatprep.subr.bf16.mxu1 %v222_v16 }
  0x1f   : > { %316 = vperm.xlu1 %710, %v254_v37   ;;  %311 = vperm.xlu0 %709, %v253_v38  }
  0x21   : > { %643 = vmatpush3.bf16.msra.mxu0 %v222_v16  ;;  %679 = vmatpush3.bf16.msra.mxu1 %v222_v16 }
  0x22   : > { %644 = vmatprep.subr.bf16.mxu0 %v223_v21  ;;  %672 = vmatprep.subr.bf16.mxu1 %v223_v21 }
  0x23   : > { %326 = vperm.xlu1 %710, %v256_v41   ;;  %321 = vperm.xlu0 %709, %v255_v42  }
  0x25   : > { %645 = vmatpush3.bf16.msra.mxu0 %v223_v21  ;;  %680 = vmatpush3.bf16.msra.mxu1 %v223_v21 }
  0x26   : > { %646 = vmatprep.subr.bf16.mxu0 %v224_v26  ;;  %673 = vmatprep.subr.bf16.mxu1 %v224_v26 }
  0x27   : > { %336 = vperm.xlu1 %710, %v258_v45   ;;  %331 = vperm.xlu0 %709, %v257_v46  }
  0x29   : > { %647 = vmatpush3.bf16.msra.mxu0 %v224_v26  ;;  %681 = vmatpush3.bf16.msra.mxu1 %v224_v26 }
  0x2a   : > { %648 = vmatprep.subr.bf16.mxu0 %v225_v31  ;;  %674 = vmatprep.subr.bf16.mxu1 %v225_v31 }
  0x2d   : > { %649 = vmatpush3.bf16.msra.mxu0 %v225_v31  ;;  %682 = vmatpush3.bf16.msra.mxu1 %v225_v31 }
  0x2e   : > { %650 = vmatprep.subr.bf16.mxu0 %v226_v36  ;;  %675 = vmatprep.subr.bf16.mxu1 %v226_v36 }
  0x31   : > { %651 = vmatpush3.bf16.msra.mxu0 %v226_v36  ;;  %683 = vmatpush3.bf16.msra.mxu1 %v226_v36 }
  0x34   : > { %653 = vmatmul.mubr.bf16.vlgmr.msra.gmra.mrb[0].mxu0 %v713_v39  ;;  %661 = vmatmul.mubr.bf16.vlgmr.msra.gmra.mrb[0].mxu1 %v714_v40 }
  0x35   : > { %656 = vmatprep.mubr.bf16.mxu0 %v715_v43  ;;  %664 = vmatprep.mubr.bf16.mxu1 %v716_v44 }
  0x3c   : > { %657 = vmatmul.mubr.bf16.gmra.mrb[4].mxu0 %v717_v47  ;;  %665 = vmatmul.mubr.bf16.gmra.mrb[4].mxu1 %v718_v48 }
  0x88   : > { %v272_v49 = vpop.permute.xlu1 %271  ;;  %v262_v50 = vpop.permute.xlu0 %261 }
  0x8c   : > { %v277_v51 = vpop.permute.xlu1 %276  ;;  %v267_v52 = vpop.permute.xlu0 %266 }
  0x90   : > { %v880_v53 = vpop.permute.xlu1 %286  ;;  %v282_v54 = vpop.permute.xlu0 %281 }
  0x96   : > { %v297_v55 = vpop.permute.xlu1 %296  ;;  %v292_v56 = vpop.permute.xlu0 %291 }
  0x9a   : > { %v307_v57 = vpop.permute.xlu1 %306  ;;  %v302_v58 = vpop.permute.xlu0 %301 }
  0x9e   : > { %v317_v59 = vpop.permute.xlu1 %316  ;;  %v312_v60 = vpop.permute.xlu0 %311 }
  0xa2   : > { %v327_v61 = vpop.permute.xlu1 %326  ;;  %v322_v62 = vpop.permute.xlu0 %321 }
  0xa6   : > { %v337_v23 = vpop.permute.xlu1 %336  ;;  %v332_v24 = vpop.permute.xlu0 %331 }
 0x107   : > { %v654_v63 = vpop.f32.mrb[0].mxu0  ;;  %v662_v0 = vpop.f32.mrb[0].mxu1 }
 0x108   : > { %v430_v1 = vadd.f32 %v654_v63, %v272_v49  ;;  %v462_v2 = vadd.f32 %v662_v0, %v312_v60  ;;  %v421_v3 = vpop.f32.mrb[1].mxu0  ;;  %v453_v4 = vpop.f32.mrb[1].mxu1 }
 0x109   : > { %v422_v5 = vadd.f32 %v421_v3, %v262_v50  ;;  %v454_v6 = vadd.f32 %v453_v4, %v302_v58  ;;  %v655_v7 = vpop.f32.mrb[2].mxu0  ;;  %v663_v8 = vpop.f32.mrb[2].mxu1 }
 0x10a   : > { %v486_v9 = vmax.f32 %v430_v1, 0.0  ;;  %v494_v10 = vmax.f32 %v462_v2, 0.0  ;;  %v433_v11 = vadd.f32 %v655_v7, %v277_v51  ;;  %v465_v12 = vadd.f32 %v663_v8, %v317_v59  ;;  %v424_v13 = vpop.f32.mrb[3].mxu0  ;;  %v456_v14 = vpop.f32.mrb[3].mxu1 }
 0x10b   : > { %v484_v15 = vmax.f32 %v422_v5, 0.0  ;;  %v492_v16 = vmax.f32 %v454_v6, 0.0  ;;  %v425_v17 = vadd.f32 %v424_v13, %v267_v52  ;;  %v457_v18 = vadd.f32 %v456_v14, %v307_v57 }
 0x10c   : > { %502 = vst [vmem:[%s887_s26 + $0x10] sm:$0xff] %v486_v9  ;;  %510 = vst [vmem:[%s887_s26 + $0x50] sm:$0xff] %v494_v10  ;;  %v487_v19 = vmax.f32 %v433_v11, 0.0  ;;  %v495_v20 = vmax.f32 %v465_v12, 0.0 }
 0x10d   : > { %500 = vst [vmem:[%s887_s26] sm:$0xff] %v484_v15  ;;  %508 = vst [vmem:[%s887_s26 + $0x40] sm:$0xff] %v492_v16  ;;  %v485_v21 = vmax.f32 %v425_v17, 0.0  ;;  %v493_v22 = vmax.f32 %v457_v18, 0.0 }
 0x10e   : > { %503 = vst [vmem:[%s887_s26 + $0x18] sm:$0xff] %v487_v19  ;;  %511 = vst [vmem:[%s887_s26 + $0x58] sm:$0xff] %v495_v20 }
 0x10f   : > { %501 = vst [vmem:[%s887_s26 + $0x8] sm:$0xff] %v485_v21  ;;  %509 = vst [vmem:[%s887_s26 + $0x48] sm:$0xff] %v493_v22  ;;  %v658_v25 = vpop.f32.mrb[4].mxu0  ;;  %v666_v26 = vpop.f32.mrb[4].mxu1 }
 0x110   : > { %v446_v27 = vadd.f32 %v658_v25, %v292_v56  ;;  %v478_v28 = vadd.f32 %v666_v26, %v332_v24  ;;  %v437_v29 = vpop.f32.mrb[5].mxu0  ;;  %v469_v30 = vpop.f32.mrb[5].mxu1 }
 0x111   : > { %v438_v31 = vadd.f32 %v437_v29, %v282_v54  ;;  %v470_v32 = vadd.f32 %v469_v30, %v322_v62  ;;  %v659_v33 = vpop.f32.mrb[6].mxu0  ;;  %v667_v34 = vpop.f32.mrb[6].mxu1 }
 0x112   : > { %v490_v35 = vmax.f32 %v446_v27, 0.0  ;;  %v498_v36 = vmax.f32 %v478_v28, 0.0  ;;  %v449_v37 = vadd.f32 %v659_v33, %v297_v55  ;;  %v481_v38 = vadd.f32 %v667_v34, %v337_v23  ;;  %v440_v39 = vpop.f32.mrb[7].mxu0  ;;  %v472_v40 = vpop.f32.mrb[7].mxu1 }
 0x113   : > { %v488_v41 = vmax.f32 %v438_v31, 0.0  ;;  %v496_v42 = vmax.f32 %v470_v32, 0.0  ;;  %v441_v43 = vadd.f32 %v440_v39, %v880_v53  ;;  %v473_v44 = vadd.f32 %v472_v40, %v327_v61 }
 0x114   : > { %506 = vst [vmem:[%s887_s26 + $0x30] sm:$0xff] %v490_v35  ;;  %514 = vst [vmem:[%s887_s26 + $0x70] sm:$0xff] %v498_v36  ;;  %v491_v45 = vmax.f32 %v449_v37, 0.0  ;;  %v499_v46 = vmax.f32 %v481_v38, 0.0 }
 0x115   : > { %504 = vst [vmem:[%s887_s26 + $0x20] sm:$0xff] %v488_v41  ;;  %512 = vst [vmem:[%s887_s26 + $0x60] sm:$0xff] %v496_v42  ;;  %v489_v47 = vmax.f32 %v441_v43, 0.0  ;;  %v497_v48 = vmax.f32 %v473_v44, 0.0 }
 0x116   : > { %507 = vst [vmem:[%s887_s26 + $0x38] sm:$0xff] %v491_v45  ;;  %515 = vst [vmem:[%s887_s26 + $0x78] sm:$0xff] %v499_v46 }
 0x117   : > { %505 = vst [vmem:[%s887_s26 + $0x28] sm:$0xff] %v489_v47  ;;  %513 = vst [vmem:[%s887_s26 + $0x68] sm:$0xff] %v497_v48 }
 0x118 PF: > { %s13_s14 = sadd.s32 1, %s741_s14   ;;  %s919_s12 = smov %s737_s13 }
 0x119   : > { %p10_p5 = scmp.ge.s32.totalorder %s13_s14, 4   ;;  %s920_s13 = smov %s922_s15 }
 0x11b   :  { %12 = sbr.rel (!%p10_p5) target bundleno = 2 (0x2), region = 62 }

// kernel: tpu_custom_call.1
= control target key start
LH: loop header
LB: loop body
LE: loop exit
PB: predicated region body
PF: predicated region fallthrough
CT: control target
= control target key end

     0   :  { %s764_s12 = smov 0   ;;  %s766_s13 = smov 0   ;;  %s915_s0 = inlined_call_operand.vmem [shape: f32[2,128,8], index: 0, kind: input, shape index: {}]   ;;  %s916_s1 = inlined_call_operand.vmem [shape: bf16[128,128], index: 1, kind: input, shape index: {}]   ;;  %s917_s2 = inlined_call_operand.vmem [shape: f32[128,1], index: 2, kind: input, shape index: {}]   ;;  %s918_s3 = inlined_call_operand.vmem [shape: f32[2,128,8], index: 3, kind: output, shape index: {}]  }
   0x1   :  { %s768_s14 = smov 0  }
   0x2 LB: > { %s25_s15 = sadd.s32 1, %s737_s13  ;;  %p603_p0 = scmp.ge.s32.totalorder %s741_s14, 1  ;;  %s741_s14 = sphi %s768_s14, %s13_s14   ;;  %s737_s13 = sphi %s766_s13, %s920_s13   ;;  %s733_s12 = sphi %s764_s12, %s919_s12  }
   0x3   : > { %p27_p1 = scmp.ge.s32.totalorder %s25_s15, 2  ;;  %p156_p2 = scmp.lt.s32.totalorder %s741_s14, 3 }
   0x5   : > { %s922_s15 = smov (%p27_p1, %s25_s15), 0  ;;  %p157_p3 = pnand %p603_p0, %p156_p2 }
   0x6   : > { %p186_p4 = scmp.lt.s32.totalorder (!%p157_p3), %s733_s12, 1  ;;  %v711_v0 = vld [vmem:[%s916_s1] sm:$0xff] (!%p157_p3)   ;;  %v743_v2 = vmov (!%p157_p3), 0   ;;  %v245_v14 = vld [vmem:[%s917_s2 + $0x10] sm:$0xff] (!%p157_p3)  ;;  %v246_v19 = vld [vmem:[%s917_s2 + $0x18] sm:$0xff] (!%p157_p3) }
   0x7   : > { %160 = sbr.rel (%p157_p3) target bundleno = 280 (0x118), region = 32  ;;  %v712_v1 = vld [vmem:[%s916_s1 + $0x20] sm:$0xff] (!%p157_p3)   ;;  %652 = vmatprep.mubr.bf16.mxu0 (!%p157_p3), %v711_v0  ;;  %710 = vset.pattern.permute.xlu1 (!%p157_p3), %v743_v2  ;;  %v244_v20 = vld [vmem:[%s917_s2 + $0x8] sm:$0xff] (!%p157_p3)  ;;  %v250_v29 = vld [vmem:[%s917_s2 + $0x38] sm:$0xff] (!%p157_p3) }
   0x8   : > { %660 = vmatprep.mubr.bf16.mxu1 (!%p157_p3), %v712_v1  ;;  %709 = vset.pattern.permute.xlu0 (!%p157_p3), %v743_v2  ;;  %v243_v15 = vld [vmem:[%s917_s2] sm:$0xff] (!%p157_p3)  ;;  %v248_v24 = vld [vmem:[%s917_s2 + $0x28] sm:$0xff] (!%p157_p3)  ;;  %v249_v30 = vld [vmem:[%s917_s2 + $0x30] sm:$0xff] (!%p157_p3) }
   0x9   : > { %271 = vperm.xlu1 (!%p157_p3), %710, %v245_v14   ;;  %261 = vperm.xlu0 (!%p157_p3), %709, %v243_v15   ;;  %v247_v25 = vld [vmem:[%s917_s2 + $0x20] sm:$0xff] (!%p157_p3)  ;;  %v252_v34 = vld [vmem:[%s917_s2 + $0x48] sm:$0xff] (!%p157_p3)  ;;  %v254_v37 = vld [vmem:[%s917_s2 + $0x58] sm:$0xff] (!%p157_p3) }
   0xa   : > { %v251_v35 = vld [vmem:[%s917_s2 + $0x40] sm:$0xff] (!%p157_p3)  ;;  %v253_v38 = vld [vmem:[%s917_s2 + $0x50] sm:$0xff] (!%p157_p3)  ;;  %v713_v39 = vld [vmem:[%s916_s1 + $0x8] sm:$0xff] (!%p157_p3)  }
   0xb   : > { %v714_v40 = vld [vmem:[%s916_s1 + $0x28] sm:$0xff] (!%p157_p3)   ;;  %v255_v42 = vld [vmem:[%s917_s2 + $0x60] sm:$0xff] (!%p157_p3)  ;;  %v715_v43 = vld [vmem:[%s916_s1 + $0x10] sm:$0xff] (!%p157_p3)  }
   0xc   : > { %v256_v41 = vld [vmem:[%s917_s2 + $0x68] sm:$0xff] (!%p157_p3)  ;;  %v716_v44 = vld [vmem:[%s916_s1 + $0x30] sm:$0xff] (!%p157_p3)   ;;  %v258_v45 = vld [vmem:[%s917_s2 + $0x78] sm:$0xff] (!%p157_p3) }
   0xd   : > { %276 = vperm.xlu1 (!%p157_p3), %710, %v246_v19   ;;  %266 = vperm.xlu0 (!%p157_p3), %709, %v244_v20   ;;  %v257_v46 = vld [vmem:[%s917_s2 + $0x70] sm:$0xff] (!%p157_p3)  ;;  %v717_v47 = vld [vmem:[%s916_s1 + $0x18] sm:$0xff] (!%p157_p3)  }
   0xe   : > { %s924_s12 = smov (!%p186_p4, %s733_s12), 1  ;;  %v718_v48 = vld [vmem:[%s916_s1 + $0x38] sm:$0xff]  }
   0xf   : > { %s618_s20 = sshll.u32 %s924_s12, 7 }
  0x10   : > { %s796_s23 = scalar_lea.vmem %s915_s0, %s618_s20  ;;  %s887_s26 = scalar_lea.vmem %s918_s3, %s618_s20 }
  0x11   : > { %v203_v3 = vld [vmem:[%s796_s23] sm:$0xff]  ;;  %v204_v4 = vld [vmem:[%s796_s23 + $0x8] sm:$0xff]  ;;  %v205_v5 = vld [vmem:[%s796_s23 + $0x10] sm:$0xff]  ;;  %286 = vperm.xlu1 %710, %v248_v24   ;;  %281 = vperm.xlu0 %709, %v247_v25  }
  0x12   : > { %v219_v6 = vpack.c.bf16 %v204_v4, %v203_v3  ;;  %v206_v7 = vld [vmem:[%s796_s23 + $0x18] sm:$0xff]  ;;  %v207_v9 = vld [vmem:[%s796_s23 + $0x20] sm:$0xff]  ;;  %v208_v10 = vld [vmem:[%s796_s23 + $0x28] sm:$0xff] }
  0x13   : > { %v220_v8 = vpack.c.bf16 %v206_v7, %v205_v5  ;;  %v221_v11 = vpack.c.bf16 %v208_v10, %v207_v9  ;;  %v209_v12 = vld [vmem:[%s796_s23 + $0x30] sm:$0xff]  ;;  %v210_v13 = vld [vmem:[%s796_s23 + $0x38] sm:$0xff]  ;;  %v211_v17 = vld [vmem:[%s796_s23 + $0x40] sm:$0xff] }
  0x14   : > { %636 = vmatprep.subr.bf16.mxu0 %v219_v6  ;;  %668 = vmatprep.subr.bf16.mxu1 %v219_v6  ;;  %v222_v16 = vpack.c.bf16 %v210_v13, %v209_v12  ;;  %v212_v18 = vld [vmem:[%s796_s23 + $0x48] sm:$0xff]  ;;  %v213_v22 = vld [vmem:[%s796_s23 + $0x50] sm:$0xff]  ;;  %v214_v23 = vld [vmem:[%s796_s23 + $0x58] sm:$0xff] }
  0x15   : > { %637 = vmatpush3.bf16.msra.mxu0 %v219_v6  ;;  %676 = vmatpush3.bf16.msra.mxu1 %v219_v6  ;;  %v223_v21 = vpack.c.bf16 %v212_v18, %v211_v17  ;;  %v224_v26 = vpack.c.bf16 %v214_v23, %v213_v22  ;;  %v215_v27 = vld [vmem:[%s796_s23 + $0x60] sm:$0xff]  ;;  %v216_v28 = vld [vmem:[%s796_s23 + $0x68] sm:$0xff]  ;;  %v217_v32 = vld [vmem:[%s796_s23 + $0x70] sm:$0xff] }
  0x16   : > { %638 = vmatprep.subr.bf16.mxu0 %v220_v8  ;;  %669 = vmatprep.subr.bf16.mxu1 %v220_v8  ;;  %v225_v31 = vpack.c.bf16 %v216_v28, %v215_v27  ;;  %v218_v33 = vld [vmem:[%s796_s23 + $0x78] sm:$0xff] }
  0x17   : > { %296 = vperm.xlu1 %710, %v250_v29   ;;  %291 = vperm.xlu0 %709, %v249_v30   ;;  %v226_v36 = vpack.c.bf16 %v218_v33, %v217_v32 }
  0x19   : > { %639 = vmatpush3.bf16.msra.mxu0 %v220_v8  ;;  %677 = vmatpush3.bf16.msra.mxu1 %v220_v8 }
  0x1a   : > { %640 = vmatprep.subr.bf16.mxu0 %v221_v11  ;;  %670 = vmatprep.subr.bf16.mxu1 %v221_v11 }
  0x1b   : > { %306 = vperm.xlu1 %710, %v252_v34   ;;  %301 = vperm.xlu0 %709, %v251_v35  }
  0x1d   : > { %641 = vmatpush3.bf16.msra.mxu0 %v221_v11  ;;  %678 = vmatpush3.bf16.msra.mxu1 %v221_v11 }
  0x1e   : > { %642 = vmatprep.subr.bf16.mxu0 %v222_v16  ;;  %671 = vmatprep.subr.bf16.mxu1 %v222_v16 }
  0x1f   : > { %316 = vperm.xlu1 %710, %v254_v37   ;;  %311 = vperm.xlu0 %709, %v253_v38  }
  0x21   : > { %643 = vmatpush3.bf16.msra.mxu0 %v222_v16  ;;  %679 = vmatpush3.bf16.msra.mxu1 %v222_v16 }
  0x22   : > { %644 = vmatprep.subr.bf16.mxu0 %v223_v21  ;;  %672 = vmatprep.subr.bf16.mxu1 %v223_v21 }
  0x23   : > { %326 = vperm.xlu1 %710, %v256_v41   ;;  %321 = vperm.xlu0 %709, %v255_v42  }
  0x25   : > { %645 = vmatpush3.bf16.msra.mxu0 %v223_v21  ;;  %680 = vmatpush3.bf16.msra.mxu1 %v223_v21 }
  0x26   : > { %646 = vmatprep.subr.bf16.mxu0 %v224_v26  ;;  %673 = vmatprep.subr.bf16.mxu1 %v224_v26 }
  0x27   : > { %336 = vperm.xlu1 %710, %v258_v45   ;;  %331 = vperm.xlu0 %709, %v257_v46  }
  0x29   : > { %647 = vmatpush3.bf16.msra.mxu0 %v224_v26  ;;  %681 = vmatpush3.bf16.msra.mxu1 %v224_v26 }
  0x2a   : > { %648 = vmatprep.subr.bf16.mxu0 %v225_v31  ;;  %674 = vmatprep.subr.bf16.mxu1 %v225_v31 }
  0x2d   : > { %649 = vmatpush3.bf16.msra.mxu0 %v225_v31  ;;  %682 = vmatpush3.bf16.msra.mxu1 %v225_v31 }
  0x2e   : > { %650 = vmatprep.subr.bf16.mxu0 %v226_v36  ;;  %675 = vmatprep.subr.bf16.mxu1 %v226_v36 }
  0x31   : > { %651 = vmatpush3.bf16.msra.mxu0 %v226_v36  ;;  %683 = vmatpush3.bf16.msra.mxu1 %v226_v36 }
  0x34   : > { %653 = vmatmul.mubr.bf16.vlgmr.msra.gmra.mrb[0].mxu0 %v713_v39  ;;  %661 = vmatmul.mubr.bf16.vlgmr.msra.gmra.mrb[0].mxu1 %v714_v40 }
  0x35   : > { %656 = vmatprep.mubr.bf16.mxu0 %v715_v43  ;;  %664 = vmatprep.mubr.bf16.mxu1 %v716_v44 }
  0x3c   : > { %657 = vmatmul.mubr.bf16.gmra.mrb[4].mxu0 %v717_v47  ;;  %665 = vmatmul.mubr.bf16.gmra.mrb[4].mxu1 %v718_v48 }
  0x88   : > { %v272_v49 = vpop.permute.xlu1 %271  ;;  %v262_v50 = vpop.permute.xlu0 %261 }
  0x8c   : > { %v277_v51 = vpop.permute.xlu1 %276  ;;  %v267_v52 = vpop.permute.xlu0 %266 }
  0x90   : > { %v880_v53 = vpop.permute.xlu1 %286  ;;  %v282_v54 = vpop.permute.xlu0 %281 }
  0x96   : > { %v297_v55 = vpop.permute.xlu1 %296  ;;  %v292_v56 = vpop.permute.xlu0 %291 }
  0x9a   : > { %v307_v57 = vpop.permute.xlu1 %306  ;;  %v302_v58 = vpop.permute.xlu0 %301 }
  0x9e   : > { %v317_v59 = vpop.permute.xlu1 %316  ;;  %v312_v60 = vpop.permute.xlu0 %311 }
  0xa2   : > { %v327_v61 = vpop.permute.xlu1 %326  ;;  %v322_v62 = vpop.permute.xlu0 %321 }
  0xa6   : > { %v337_v23 = vpop.permute.xlu1 %336  ;;  %v332_v24 = vpop.permute.xlu0 %331 }
 0x107   : > { %v654_v63 = vpop.f32.mrb[0].mxu0  ;;  %v662_v0 = vpop.f32.mrb[0].mxu1 }
 0x108   : > { %v430_v1 = vadd.f32 %v654_v63, %v272_v49  ;;  %v462_v2 = vadd.f32 %v662_v0, %v312_v60  ;;  %v421_v3 = vpop.f32.mrb[1].mxu0  ;;  %v453_v4 = vpop.f32.mrb[1].mxu1 }
 0x109   : > { %v422_v5 = vadd.f32 %v421_v3, %v262_v50  ;;  %v454_v6 = vadd.f32 %v453_v4, %v302_v58  ;;  %v655_v7 = vpop.f32.mrb[2].mxu0  ;;  %v663_v8 = vpop.f32.mrb[2].mxu1 }
 0x10a   : > { %v486_v9 = vmax.f32 %v430_v1, 0.0  ;;  %v494_v10 = vmax.f32 %v462_v2, 0.0  ;;  %v433_v11 = vadd.f32 %v655_v7, %v277_v51  ;;  %v465_v12 = vadd.f32 %v663_v8, %v317_v59  ;;  %v424_v13 = vpop.f32.mrb[3].mxu0  ;;  %v456_v14 = vpop.f32.mrb[3].mxu1 }
 0x10b   : > { %v484_v15 = vmax.f32 %v422_v5, 0.0  ;;  %v492_v16 = vmax.f32 %v454_v6, 0.0  ;;  %v425_v17 = vadd.f32 %v424_v13, %v267_v52  ;;  %v457_v18 = vadd.f32 %v456_v14, %v307_v57 }
 0x10c   : > { %502 = vst [vmem:[%s887_s26 + $0x10] sm:$0xff] %v486_v9  ;;  %510 = vst [vmem:[%s887_s26 + $0x50] sm:$0xff] %v494_v10  ;;  %v487_v19 = vmax.f32 %v433_v11, 0.0  ;;  %v495_v20 = vmax.f32 %v465_v12, 0.0 }
 0x10d   : > { %500 = vst [vmem:[%s887_s26] sm:$0xff] %v484_v15  ;;  %508 = vst [vmem:[%s887_s26 + $0x40] sm:$0xff] %v492_v16  ;;  %v485_v21 = vmax.f32 %v425_v17, 0.0  ;;  %v493_v22 = vmax.f32 %v457_v18, 0.0 }
 0x10e   : > { %503 = vst [vmem:[%s887_s26 + $0x18] sm:$0xff] %v487_v19  ;;  %511 = vst [vmem:[%s887_s26 + $0x58] sm:$0xff] %v495_v20 }
 0x10f   : > { %501 = vst [vmem:[%s887_s26 + $0x8] sm:$0xff] %v485_v21  ;;  %509 = vst [vmem:[%s887_s26 + $0x48] sm:$0xff] %v493_v22  ;;  %v658_v25 = vpop.f32.mrb[4].mxu0  ;;  %v666_v26 = vpop.f32.mrb[4].mxu1 }
 0x110   : > { %v446_v27 = vadd.f32 %v658_v25, %v292_v56  ;;  %v478_v28 = vadd.f32 %v666_v26, %v332_v24  ;;  %v437_v29 = vpop.f32.mrb[5].mxu0  ;;  %v469_v30 = vpop.f32.mrb[5].mxu1 }
 0x111   : > { %v438_v31 = vadd.f32 %v437_v29, %v282_v54  ;;  %v470_v32 = vadd.f32 %v469_v30, %v322_v62  ;;  %v659_v33 = vpop.f32.mrb[6].mxu0  ;;  %v667_v34 = vpop.f32.mrb[6].mxu1 }
 0x112   : > { %v490_v35 = vmax.f32 %v446_v27, 0.0  ;;  %v498_v36 = vmax.f32 %v478_v28, 0.0  ;;  %v449_v37 = vadd.f32 %v659_v33, %v297_v55  ;;  %v481_v38 = vadd.f32 %v667_v34, %v337_v23  ;;  %v440_v39 = vpop.f32.mrb[7].mxu0  ;;  %v472_v40 = vpop.f32.mrb[7].mxu1 }
 0x113   : > { %v488_v41 = vmax.f32 %v438_v31, 0.0  ;;  %v496_v42 = vmax.f32 %v470_v32, 0.0  ;;  %v441_v43 = vadd.f32 %v440_v39, %v880_v53  ;;  %v473_v44 = vadd.f32 %v472_v40, %v327_v61 }
 0x114   : > { %506 = vst [vmem:[%s887_s26 + $0x30] sm:$0xff] %v490_v35  ;;  %514 = vst [vmem:[%s887_s26 + $0x70] sm:$0xff] %v498_v36  ;;  %v491_v45 = vmax.f32 %v449_v37, 0.0  ;;  %v499_v46 = vmax.f32 %v481_v38, 0.0 }
 0x115   : > { %504 = vst [vmem:[%s887_s26 + $0x20] sm:$0xff] %v488_v41  ;;  %512 = vst [vmem:[%s887_s26 + $0x60] sm:$0xff] %v496_v42  ;;  %v489_v47 = vmax.f32 %v441_v43, 0.0  ;;  %v497_v48 = vmax.f32 %v473_v44, 0.0 }
 0x116   : > { %507 = vst [vmem:[%s887_s26 + $0x38] sm:$0xff] %v491_v45  ;;  %515 = vst [vmem:[%s887_s26 + $0x78] sm:$0xff] %v499_v46 }
 0x117   : > { %505 = vst [vmem:[%s887_s26 + $0x28] sm:$0xff] %v489_v47  ;;  %513 = vst [vmem:[%s887_s26 + $0x68] sm:$0xff] %v497_v48 }
 0x118 PF: > { %s13_s14 = sadd.s32 1, %s741_s14   ;;  %s919_s12 = smov %s737_s13 }
 0x119   : > { %p10_p5 = scmp.ge.s32.totalorder %s13_s14, 4   ;;  %s920_s13 = smov %s922_s15 }
 0x11b   :  { %12 = sbr.rel (!%p10_p5) target bundleno = 2 (0x2), region = 62 }

</bundles_post_ra>
